<compile_context>
chip_gen: v6e
topology: v6e:2x2x1
jax: 0.10.0
libtpu: 0.0.40
codegen_flags: <defaults>
</compile_context>

<pallas_src>
import functools

import jax
import jax.numpy as jnp
from jax import lax
from jax.experimental import pallas as pl
from jax.experimental.pallas import tpu as pltpu


def _round_up(x, m):
    return ((x + m - 1) // m) * m


def _mlp_kernel(x_ref, w1_ref, b1_ref, w2_ref, b2_ref, w3_ref, b3_ref,
                *rest, compute_dtype, apply_dropout):
    """Fused 3-layer MLP forward on one (tm, IN) activation tile.

    x_ref  : (TM, IN)            VMEM, streamed per grid step
    w*_ref : (fan_in, fan_out)   VMEM, resident (constant index_map), compute_dtype
    b*_ref : (1, fan_out)        VMEM, resident, f32 lane-dense rows
    m*_ref : (TM, H*)            VMEM, pre-scaled dropout keep masks (training only)
    o_ref  : (TM, OUT)           VMEM
    """
    if apply_dropout:
        m1_ref, m2_ref, o_ref = rest
    else:
        (o_ref,) = rest

    cd = compute_dtype

    # Layer 1: MXU matmul (bf16 x bf16 -> f32 acc), f32 epilogue.
    x = x_ref[...].astype(cd)
    h1 = jnp.dot(x, w1_ref[...], preferred_element_type=jnp.float32)
    h1 = jnp.maximum(h1 + b1_ref[...], 0.0)
    if apply_dropout:
        h1 = h1 * m1_ref[...]          # single multiply (mask pre-scaled by 1/(1-p))

    # Layer 2.
    h2 = jnp.dot(h1.astype(cd), w2_ref[...], preferred_element_type=jnp.float32)
    h2 = jnp.maximum(h2 + b2_ref[...], 0.0)
    if apply_dropout:
        h2 = h2 * m2_ref[...]

    # Layer 3 (no activation).
    y = jnp.dot(h2.astype(cd), w3_ref[...], preferred_element_type=jnp.float32)
    y = y + b3_ref[...]

    o_ref[...] = y.astype(o_ref.dtype)


def regression_network_forward(x, params, *, dropout_val=0.0, deterministic=True,
                               rng_key=None, tile_m=1024,
                               compute_dtype=jnp.bfloat16):
    """Pallas implementation of RegressionNetwork.forward.

    x      : (B, input_size) float
    params : (w1 (in,h1), b1 (h1,), w2 (h1,h2), b2 (h2,), w3 (h2,out), b3 (out,))
    deterministic=True  -> eval mode (dropout is identity, masks never created)
    deterministic=False -> training mode (inverted dropout, keep prob 1-p)
    """
    w1, b1, w2, b2, w3, b3 = params
    B, IN = x.shape
    H1 = w1.shape[1]
    H2 = w2.shape[1]
    OUT = w3.shape[1]

    apply_dropout = (not deterministic) and float(dropout_val) > 0.0

    # --- Batch tile selection -------------------------------------------------
    # Large tiles amortize per-grid-step pipeline overhead and give the MXU a
    # tall M; cap so there are at least 2 tiles when B >= 16 so the "parallel"
    # axis shards across both TensorCores on v7x.  No padding: Pallas masks the
    # ragged edge tile's writeback, and every row's math is independent.
    tm = _round_up(max(1, min(int(tile_m), B)), 8)
    if B >= 16:
        tm = min(tm, _round_up(pl.cdiv(B, 2), 8))
    tm = max(tm, 8)
    n_tiles = pl.cdiv(B, tm)

    # Weights in the MXU-native dtype (one-off conversion of KB-sized arrays);
    # biases as lane-dense f32 rows.
    w1c, w2c, w3c = (w.astype(compute_dtype) for w in (w1, w2, w3))
    b1r = b1.reshape(1, H1).astype(jnp.float32)
    b2r = b2.reshape(1, H2).astype(jnp.float32)
    b3r = b3.reshape(1, OUT).astype(jnp.float32)

    def resident(shape):
        return pl.BlockSpec(shape, lambda i: (0, 0))

    def streamed(shape):
        return pl.BlockSpec(shape, lambda i: (i, 0))

    in_specs = [
        streamed((tm, IN)),                       # activations: streamed per tile
        resident((IN, H1)), resident((1, H1)),    # weights/biases: VMEM resident
        resident((H1, H2)), resident((1, H2)),
        resident((H2, OUT)), resident((1, OUT)),
    ]
    args = [x, w1c, b1r, w2c, b2r, w3c, b3r]

    if apply_dropout:
        # TODO(synk): pltpu.prng_random_bits has no interpret/CPU lowering, so
        # keep masks are drawn host-side with jax.random (semantics match
        # nn.Dropout: Bernoulli keep prob 1-p, scaled by 1/(1-p)); the RNG
        # stream is not bit-identical to torch's.
        if rng_key is None:
            rng_key = jax.random.PRNGKey(0)
        k1, k2 = jax.random.split(rng_key)
        keep_p = 1.0 - float(dropout_val)
        m1 = jax.random.bernoulli(k1, keep_p, (B, H1)).astype(jnp.float32) / keep_p
        m2 = jax.random.bernoulli(k2, keep_p, (B, H2)).astype(jnp.float32) / keep_p
        in_specs += [streamed((tm, H1)), streamed((tm, H2))]
        args += [m1, m2]

    kernel = functools.partial(_mlp_kernel, compute_dtype=compute_dtype,
                               apply_dropout=apply_dropout)

    out = pl.pallas_call(
        kernel,
        out_shape=jax.ShapeDtypeStruct((B, OUT), x.dtype),
        grid=(n_tiles,),
        in_specs=in_specs,
        out_specs=pl.BlockSpec((tm, OUT), lambda i: (i, 0)),
        compiler_params=pltpu.CompilerParams(
            dimension_semantics=("parallel",),   # independent batch tiles
        ),
    )(*args)
    return out


def _init_params(key, input_size, hidden1, hidden2, output_size):
    """PyTorch-style nn.Linear init: U(-1/sqrt(fan_in), 1/sqrt(fan_in))."""
    ks = jax.random.split(key, 6)

    def lin(kw, kb, fan_in, fan_out):
        bound = 1.0 / (fan_in ** 0.5)
        w = jax.random.uniform(kw, (fan_in, fan_out), jnp.float32, -bound, bound)
        b = jax.random.uniform(kb, (fan_out,), jnp.float32, -bound, bound)
        return w, b

    w1, b1 = lin(ks[0], ks[1], input_size, hidden1)
    w2, b2 = lin(ks[2], ks[3], hidden1, hidden2)
    w3, b3 = lin(ks[4], ks[5], hidden2, output_size)
    return (w1, b1, w2, b2, w3, b3)


def _reference_forward(x, params):
    """Pure-JAX reference (eval mode: dropout = identity)."""
    w1, b1, w2, b2, w3, b3 = params
    hp = lax.Precision.HIGHEST
    h = jnp.maximum(jnp.dot(x, w1, precision=hp) + b1, 0.0)
    h = jnp.maximum(jnp.dot(h, w2, precision=hp) + b2, 0.0)
    return jnp.dot(h, w3, precision=hp) + b3


if __name__ == "__main__":
    key = jax.random.PRNGKey(0)
    kx, kp, kd = jax.random.split(key, 3)

    batch, input_size, hidden1, hidden2, output_size = 64, 32, 64, 32, 8
    dropout_val = 0.25

    x = jax.random.normal(kx, (batch, input_size), dtype=jnp.float32)
    params = _init_params(kp, input_size, hidden1, hidden2, output_size)

    # Eval mode (dropout = identity) — verified against a pure-JAX f32 reference.
    y = jax.block_until_ready(
        regression_network_forward(x, params, dropout_val=dropout_val,
                                   deterministic=True))
    ref = jax.block_until_ready(_reference_forward(x, params))

    assert y.shape == (batch, output_size)
    assert bool(jnp.all(jnp.isfinite(y))), "kernel produced non-finite output"
    max_diff = float(jnp.max(jnp.abs(y - ref)))
    assert jnp.allclose(y, ref, rtol=5e-2, atol=3e-2), f"max abs diff {max_diff}"

    # Training mode: inverted dropout via pre-scaled keep masks.
    y_train = jax.block_until_ready(
        regression_network_forward(x, params, dropout_val=dropout_val,
                                   deterministic=False, rng_key=kd))
    assert y_train.shape == (batch, output_size)
    assert bool(jnp.all(jnp.isfinite(y_train))), "training-mode output non-finite"

    print("KERNEL_OK")
</pallas_src>

<mosaic_0001>
module attributes {stable_mosaic.version = 11 : i64} {
  func.func @_mlp_kernel(%arg0: i32, %arg1: memref<32x32xf32, #tpu.memory_space<vmem>>, %arg2: memref<32x64xbf16, #tpu.memory_space<vmem>>, %arg3: memref<1x64xf32, #tpu.memory_space<vmem>>, %arg4: memref<64x32xbf16, #tpu.memory_space<vmem>>, %arg5: memref<1x32xf32, #tpu.memory_space<vmem>>, %arg6: memref<32x8xbf16, #tpu.memory_space<vmem>>, %arg7: memref<1x8xf32, #tpu.memory_space<vmem>>, %arg8: memref<32x8xf32, #tpu.memory_space<vmem>>) attributes {dimension_semantics = [#tpu.dimension_semantics<parallel>], iteration_bounds = array<i64: 2>, scalar_prefetch = 0 : i64, scratch_operands = 0 : i64, tpu.core_type = #tpu.core_type<tc>, window_params = [{transform_indices = @transform_0, window_bounds = array<i64: 32, 32>}, {pipeline_mode = #tpu.pipeline_mode<synchronous>, transform_indices = @transform_1, window_bounds = array<i64: 32, 64>}, {pipeline_mode = #tpu.pipeline_mode<synchronous>, transform_indices = @transform_2, window_bounds = array<i64: 1, 64>}, {pipeline_mode = #tpu.pipeline_mode<synchronous>, transform_indices = @transform_3, window_bounds = array<i64: 64, 32>}, {pipeline_mode = #tpu.pipeline_mode<synchronous>, transform_indices = @transform_4, window_bounds = array<i64: 1, 32>}, {pipeline_mode = #tpu.pipeline_mode<synchronous>, transform_indices = @transform_5, window_bounds = array<i64: 32, 8>}, {pipeline_mode = #tpu.pipeline_mode<synchronous>, transform_indices = @transform_6, window_bounds = array<i64: 1, 8>}, {transform_indices = @transform_7, window_bounds = array<i64: 32, 8>}]} {
    %c0 = arith.constant 0 : index
    %c0_0 = arith.constant 0 : index
    %0 = vector.load %arg1[%c0, %c0_0] : memref<32x32xf32, #tpu.memory_space<vmem>>, vector<32x32xf32>
    %1 = arith.truncf %0 : vector<32x32xf32> to vector<32x32xbf16>
    %c0_1 = arith.constant 0 : index
    %c0_2 = arith.constant 0 : index
    %2 = vector.load %arg2[%c0_1, %c0_2] : memref<32x64xbf16, #tpu.memory_space<vmem>>, vector<32x64xbf16>
    %cst = arith.constant dense<0.000000e+00> : vector<32x64xf32>
    %3 = tpu.matmul %1, %2, %cst {dimension_numbers = #tpu.dot_dimension_numbers<[1], [0], [0], [1], [0, 0, 1, 1], [], []>} : vector<32x32xbf16>, vector<32x64xbf16>, vector<32x64xf32> -> vector<32x64xf32>
    %c0_3 = arith.constant 0 : index
    %c0_4 = arith.constant 0 : index
    %4 = vector.load %arg3[%c0_3, %c0_4] : memref<1x64xf32, #tpu.memory_space<vmem>>, vector<1x64xf32>
    %5 = vector.broadcast %4 : vector<1x64xf32> to vector<32x64xf32>
    %6 = arith.addf %3, %5 : vector<32x64xf32>
    %cst_5 = arith.constant 0.000000e+00 : f32
    %7 = vector.broadcast %cst_5 : f32 to vector<32x64xf32>
    %8 = arith.maximumf %6, %7 : vector<32x64xf32>
    %9 = arith.truncf %8 : vector<32x64xf32> to vector<32x64xbf16>
    %c0_6 = arith.constant 0 : index
    %c0_7 = arith.constant 0 : index
    %10 = vector.load %arg4[%c0_6, %c0_7] : memref<64x32xbf16, #tpu.memory_space<vmem>>, vector<64x32xbf16>
    %cst_8 = arith.constant dense<0.000000e+00> : vector<32x32xf32>
    %11 = tpu.matmul %9, %10, %cst_8 {dimension_numbers = #tpu.dot_dimension_numbers<[1], [0], [0], [1], [0, 0, 1, 1], [], []>} : vector<32x64xbf16>, vector<64x32xbf16>, vector<32x32xf32> -> vector<32x32xf32>
    %c0_9 = arith.constant 0 : index
    %c0_10 = arith.constant 0 : index
    %12 = vector.load %arg5[%c0_9, %c0_10] : memref<1x32xf32, #tpu.memory_space<vmem>>, vector<1x32xf32>
    %13 = vector.broadcast %12 : vector<1x32xf32> to vector<32x32xf32>
    %14 = arith.addf %11, %13 : vector<32x32xf32>
    %cst_11 = arith.constant 0.000000e+00 : f32
    %15 = vector.broadcast %cst_11 : f32 to vector<32x32xf32>
    %16 = arith.maximumf %14, %15 : vector<32x32xf32>
    %17 = arith.truncf %16 : vector<32x32xf32> to vector<32x32xbf16>
    %c0_12 = arith.constant 0 : index
    %c0_13 = arith.constant 0 : index
    %18 = vector.load %arg6[%c0_12, %c0_13] : memref<32x8xbf16, #tpu.memory_space<vmem>>, vector<32x8xbf16>
    %cst_14 = arith.constant dense<0.000000e+00> : vector<32x8xf32>
    %19 = tpu.matmul %17, %18, %cst_14 {dimension_numbers = #tpu.dot_dimension_numbers<[1], [0], [0], [1], [0, 0, 1, 1], [], []>} : vector<32x32xbf16>, vector<32x8xbf16>, vector<32x8xf32> -> vector<32x8xf32>
    %c0_15 = arith.constant 0 : index
    %c0_16 = arith.constant 0 : index
    %20 = vector.load %arg7[%c0_15, %c0_16] : memref<1x8xf32, #tpu.memory_space<vmem>>, vector<1x8xf32>
    %21 = vector.broadcast %20 : vector<1x8xf32> to vector<32x8xf32>
    %22 = arith.addf %19, %21 : vector<32x8xf32>
    %c0_17 = arith.constant 0 : index
    %c0_18 = arith.constant 0 : index
    %23 = vector.load %arg8[%c0_17, %c0_18] : memref<32x8xf32, #tpu.memory_space<vmem>>, vector<32x8xf32>
    tpu.vector_store %arg8[%c0_17, %c0_18], %22 {strides = array<i32>} : memref<32x8xf32, #tpu.memory_space<vmem>>, vector<32x8xf32>,
    return
  }
  func.func @transform_0(%arg0: i32) -> (i32, i32) {
    %c0_i32 = arith.constant 0 : i32
    %c0_i32_0 = arith.constant 0 : i32
    return %arg0, %c0_i32 : i32, i32
  }
  func.func @transform_1(%arg0: i32) -> (i32, i32) {
    %c0_i32 = arith.constant 0 : i32
    %c0_i32_0 = arith.constant 0 : i32
    %c0_i32_1 = arith.constant 0 : i32
    return %c0_i32, %c0_i32_0 : i32, i32
  }
  func.func @transform_2(%arg0: i32) -> (i32, i32) {
    %c0_i32 = arith.constant 0 : i32
    %c0_i32_0 = arith.constant 0 : i32
    %c0_i32_1 = arith.constant 0 : i32
    return %c0_i32, %c0_i32_0 : i32, i32
  }
  func.func @transform_3(%arg0: i32) -> (i32, i32) {
    %c0_i32 = arith.constant 0 : i32
    %c0_i32_0 = arith.constant 0 : i32
    %c0_i32_1 = arith.constant 0 : i32
    return %c0_i32, %c0_i32_0 : i32, i32
  }
  func.func @transform_4(%arg0: i32) -> (i32, i32) {
    %c0_i32 = arith.constant 0 : i32
    %c0_i32_0 = arith.constant 0 : i32
    %c0_i32_1 = arith.constant 0 : i32
    return %c0_i32, %c0_i32_0 : i32, i32
  }
  func.func @transform_5(%arg0: i32) -> (i32, i32) {
    %c0_i32 = arith.constant 0 : i32
    %c0_i32_0 = arith.constant 0 : i32
    %c0_i32_1 = arith.constant 0 : i32
    return %c0_i32, %c0_i32_0 : i32, i32
  }
  func.func @transform_6(%arg0: i32) -> (i32, i32) {
    %c0_i32 = arith.constant 0 : i32
    %c0_i32_0 = arith.constant 0 : i32
    %c0_i32_1 = arith.constant 0 : i32
    return %c0_i32, %c0_i32_0 : i32, i32
  }
  func.func @transform_7(%arg0: i32) -> (i32, i32) {
    %c0_i32 = arith.constant 0 : i32
    %c0_i32_0 = arith.constant 0 : i32
    return %arg0, %c0_i32 : i32, i32
  }
}

</mosaic_0001>

<bundles_post_ra>
// kernel: tpu_custom_call.1
= control target key start
LH: loop header
LB: loop body
LE: loop exit
PB: predicated region body
PF: predicated region fallthrough
CT: control target
= control target key end

     0   :  { %s748_s24 = smov 0   ;;  %s809_s0 = inlined_call_operand.vmem [shape: f32[64,32], index: 0, kind: input, shape index: {}]   ;;  %s810_s1 = inlined_call_operand.vmem [shape: bf16[32,64], index: 1, kind: input, shape index: {}]   ;;  %s811_s2 = inlined_call_operand.vmem [shape: f32[1,64], index: 2, kind: input, shape index: {}]   ;;  %s812_s3 = inlined_call_operand.vmem [shape: bf16[64,32], index: 3, kind: input, shape index: {}]   ;;  %s813_s4 = inlined_call_operand.vmem [shape: f32[1,32], index: 4, kind: input, shape index: {}]   ;;  %s814_s5 = inlined_call_operand.vmem [shape: bf16[32,8], index: 5, kind: input, shape index: {}]   ;;  %s815_s6 = inlined_call_operand.vmem [shape: f32[1,8], index: 6, kind: input, shape index: {}]   ;;  %s816_s7 = inlined_call_operand.vmem [shape: f32[64,8], index: 7, kind: output, shape index: {}]  }
   0x1 LB: > { %s614_s25 = sadd.s32 4294967295, %s706_s24   ;;  %p618_p0 = scmp.ge.s32.totalorder %s706_s24, 1  ;;  %s706_s24 = sphi %s748_s24, %s17_s24  }
   0x2   : > { %p238_p1 = scmp.lt.s32.totalorder %s706_s24, 3 }
   0x4   : > { %p239_p2 = pnand %p618_p0, %p238_p1 }
   0x5   : > { %s619_s28 = sshll.u32 (!%p239_p2), %s614_s25, 2 }
   0x6   : > { %242 = sbr.rel (%p239_p2) target bundleno = 634 (0x27a), region = 48  ;;  %p271_p3 = scmp.lt.s32.totalorder (!%p239_p2), %s619_s28, 7 }
   0xb   : > { %v692_v0 = vld [vmem:[%s810_s1 + $0x8] sm:$0xff]   ;;  %v693_v1 = vld [vmem:[%s810_s1] sm:$0xff]   ;;  %v694_v2 = vld [vmem:[%s812_s3 + $0x18] sm:$0xff]   ;;  %s818_s28 = smov (!%p271_p3, %s619_s28), 7  ;;  %vm312_vm0 = vcmask 261120   ;;  %vm413_vm1 = vcmask 523264  }
   0xc   : > { %656 = vmatprep.subr.bf16.mxu0 %v692_v0  ;;  %664 = vmatprep.subr.bf16.mxu1 %v694_v2  ;;  %s620_s10 = sshll.u32 %s818_s28, 3  ;;  %v695_v9 = vld [vmem:[%s812_s3 + $0x10] sm:$0xff]   ;;  %v696_v10 = vld [vmem:[%s812_s3 + $0x8] sm:$0xff]   ;;  %v697_v11 = vld [vmem:[%s812_s3] sm:$0xff]   ;;  %vm553_vm2 = vcmask 64512  }
   0xd   : > { %657 = vmatpush3.bf16.msra.mxu0 %v692_v0  ;;  %665 = vmatpush3.bf16.msra.mxu1 %v694_v2  ;;  %s274_s13 = scalar_lea.vmem %s809_s0, %s620_s10  ;;  %v623_v14 = vld [vmem:[%s811_s2] ss:$0 sm:$0xff]  ;;  %v698_v27 = vld [vmem:[%s814_s5 + $0x8] sm:$0xff]   ;;  %s280_s9 = scalar_lea.vmem %s816_s7, %s620_s10 }
   0xe   : > { %658 = vmatprep.subr.bf16.mxu0 %v693_v1  ;;  %v283_v3 = vld [vmem:[%s274_s13] sm:$0xff]  ;;  %v284_v4 = vld [vmem:[%s274_s13 + $0x8] sm:$0xff]  ;;  %v285_v5 = vld [vmem:[%s274_s13 + $0x10] sm:$0xff]  ;;  %666 = vmatprep.subr.bf16.mxu1 %v695_v9 }
   0xf   : > { %v287_v6 = vpack.c.bf16 %v284_v4, %v283_v3  ;;  %v286_v7 = vld [vmem:[%s274_s13 + $0x18] sm:$0xff]  ;;  %v699_v28 = vld [vmem:[%s814_s5] sm:$0xff]  }
  0x10   : > { %v288_v8 = vpack.c.bf16 %v286_v7, %v285_v5  ;;  %v628_v31 = vld [vmem:[%s813_s4] ss:$0 sm:$0xff] }
  0x11   : > { %659 = vmatpush3.bf16.msra.mxu0 %v693_v1  ;;  %660 = vmatprep.mubr.msk.bf16.mxu0 %vm312_vm0, %v287_v6  ;;  %v635_v45 = vld [vmem:[%s815_s6] ss:$0 sm:$0xff] }
  0x12   : > { %667 = vmatpush3.bf16.msra.mxu1 %v695_v9  ;;  %676 = vmatprep.subr.bf16.mxu0 %v698_v27 }
  0x13   : > { %668 = vmatprep.subr.bf16.mxu1 %v696_v10 }
  0x14   : > { %661 = vmatmul.mubr.msk.bf16.vlgmr.msra.gmra.mxu0 %vm312_vm0, %v288_v8 }
  0x15   : > { %677 = vmatpush3.bf16.msra.mxu0 %v698_v27 }
  0x16   : > { %669 = vmatpush3.bf16.msra.mxu1 %v696_v10  ;;  %678 = vmatprep.subr.bf16.mxu0 %v699_v28 }
  0x17   : > { %670 = vmatprep.subr.bf16.mxu1 %v697_v11 }
  0x19   : > { %679 = vmatpush3.bf16.msra.mxu0 %v699_v28 }
  0x1a   : > { %671 = vmatpush3.bf16.msra.mxu1 %v697_v11 }
  0xd4   : > { %v662_v12 = vpop.f32.mrf.mxu0 }
  0xd5   : > { %v362_v18 = vadd.f32 %v662_v12, %v623_v14 }
  0xd6   : > { %v353_v13 = vpop.f32.mrf.mxu0 }
  0xd7   : > { %v354_v16 = vadd.f32 %v623_v14, %v353_v13  ;;  %v370_v24 = vmax.f32 %v362_v18, 0.0 }
  0xd8   : > { %v663_v15 = vpop.f32.mrf.mxu0 }
  0xd9   : > { %v365_v17 = vadd.f32 %v663_v15, %v623_v14  ;;  %v368_v22 = vmax.f32 %v354_v16, 0.0 }
  0xda   : > { %v356_v19 = vpop.f32.mrf.mxu0 }
  0xdb   : > { %v357_v20 = vadd.f32 %v623_v14, %v356_v19  ;;  %v371_v21 = vmax.f32 %v365_v17, 0.0 }
  0xdd   : > { %v369_v23 = vmax.f32 %v357_v20, 0.0  ;;  %v373_v26 = vpack.c.bf16 %v371_v21, %v370_v24 }
  0xdf   : > { %v372_v25 = vpack.c.bf16 %v369_v23, %v368_v22 }
  0xe1   : > { %672 = vmatprep.mubr.msk.bf16.mxu1 %vm413_vm1, %v372_v25 }
  0xe2   : > { %673 = vmatmul.mubr.msk.bf16.vlgmr.msra.gmra.mxu1 %vm413_vm1, %v373_v26 }
 0x1a2   : > { %v674_v29 = vpop.f32.mrf.mxu1 }
 0x1a3   : > { %v463_v35 = vadd.f32 %v674_v29, %v628_v31 }
 0x1a4   : > { %v454_v30 = vpop.f32.mrf.mxu1 }
 0x1a5   : > { %v455_v33 = vadd.f32 %v628_v31, %v454_v30  ;;  %v471_v41 = vmax.f32 %v463_v35, 0.0 }
 0x1a6   : > { %v675_v32 = vpop.f32.mrf.mxu1 }
 0x1a7   : > { %v466_v34 = vadd.f32 %v675_v32, %v628_v31  ;;  %v469_v39 = vmax.f32 %v455_v33, 0.0 }
 0x1a8   : > { %v457_v36 = vpop.f32.mrf.mxu1 }
 0x1a9   : > { %v458_v37 = vadd.f32 %v628_v31, %v457_v36  ;;  %v472_v38 = vmax.f32 %v466_v34, 0.0 }
 0x1ab   : > { %v470_v40 = vmax.f32 %v458_v37, 0.0  ;;  %v474_v43 = vpack.c.bf16 %v472_v38, %v471_v41 }
 0x1ad   : > { %v473_v42 = vpack.c.bf16 %v470_v40, %v469_v39 }
 0x1af   : > { %680 = vmatprep.mubr.msk.bf16.mxu0 %vm312_vm0, %v473_v42 }
 0x1b0   : > { %681 = vmatmul.mubr.msk.bf16.vlgmr.msra.gmra.mxu0 %vm312_vm0, %v474_v43 }
 0x270   : > { %v682_v44 = vpop.f32.mrf.mxu0 }
 0x271   : > { %v547_v51 = vadd.f32 %v682_v44, %v635_v45 }
 0x272   : > { %v538_v46 = vpop.f32.mrf.mxu0 }
 0x273   : > { %v539_v47 = vadd.f32 %v635_v45, %v538_v46  ;;  %556 = vst.msk [vmem:[%s280_s9 + $0x10] sm:$0xff] %vm553_vm2, %v547_v51 }
 0x274   : > { %v683_v48 = vpop.f32.mrf.mxu0 }
 0x275   : > { %554 = vst.msk [vmem:[%s280_s9] sm:$0xff] %vm553_vm2, %v539_v47  ;;  %v550_v52 = vadd.f32 %v683_v48, %v635_v45 }
 0x276   : > { %v541_v49 = vpop.f32.mrf.mxu0 }
 0x277   : > { %v542_v50 = vadd.f32 %v635_v45, %v541_v49  ;;  %557 = vst.msk [vmem:[%s280_s9 + $0x18] sm:$0xff] %vm553_vm2, %v550_v52 }
 0x279   : > { %555 = vst.msk [vmem:[%s280_s9 + $0x8] sm:$0xff] %vm553_vm2, %v542_v50 }
 0x27a PF: > { %s17_s24 = sadd.s32 1, %s706_s24  }
 0x27b   : > { %p14_p4 = scmp.ge.s32.totalorder %s17_s24, 4  }
 0x27d   :  { %16 = sbr.rel (!%p14_p4) target bundleno = 1 (0x1), region = 78 }

</bundles_post_ra>
